<compile_context>
chip_gen: v7x
topology: tpu7x:2x2x1
jax: 0.10.0
libtpu: 0.0.40
codegen_flags: <defaults>
</compile_context>

<pallas_src>
import jax
import jax.numpy as jnp
from jax import lax
from jax.experimental import pallas as pl
from jax.experimental.pallas import tpu as pltpu


def _round_up(n: int, m: int) -> int:
    return ((n + m - 1) // m) * m


def _pick_batch_tile(batch: int) -> int:
    """Lane-dense tile (multiple of 128), capped at 2048, and >= 2 grid steps
    whenever the padded batch is larger than one minimal tile (v7x megacore)."""
    b128 = _round_up(batch, 128)
    if b128 <= 128:
        return 128
    # Split into (at least) two steps; keep each step a multiple of 128 lanes.
    tb = _round_up((b128 + 1) // 2, 128)
    return min(2048, tb)


def simple_critic_kernel(s_ref, a_ref, w1s_ref, w1a_ref, b1_ref,
                         w2_ref, b2_ref, w3_ref, b3_ref, w4_ref, b4_ref,
                         oT_ref):
    # Contract both operands on their last dim:  (O, D) x (TB, D) -> (O, TB).
    # This keeps the batch-major activation tile as-is (no HBM transpose) while
    # producing feature-major intermediates (batch on the 128-lane axis).
    dn = (((1,), (1,)), ((), ()))

    s = s_ref[...].astype(jnp.bfloat16)          # (TB, S_total) in-VMEM cast
    a = a_ref[...].astype(jnp.bfloat16)          # (TB, A_total)

    # Layer 1: split-weight matmuls replace the concat.  f32 accumulate.
    h = lax.dot_general(w1s_ref[...], s, dn, preferred_element_type=jnp.float32)
    h = h + lax.dot_general(w1a_ref[...], a, dn, preferred_element_type=jnp.float32)
    h = jnp.maximum(h + b1_ref[...], 0.0)        # (256, TB) f32

    # Layer 2: (128, 256) @ (256, TB)
    h = jnp.dot(w2_ref[...], h.astype(jnp.bfloat16),
                preferred_element_type=jnp.float32)
    h = jnp.maximum(h + b2_ref[...], 0.0)        # (128, TB) f32

    # Layer 3: (64, 128) @ (128, TB)
    h = jnp.dot(w3_ref[...], h.astype(jnp.bfloat16),
                preferred_element_type=jnp.float32)
    h = jnp.maximum(h + b3_ref[...], 0.0)        # (64, TB) f32

    # Layer 4 (value head): single output row -> VPU multiply with the
    # lane-broadcast f32 w4 column + sublane (XLU) reduction.  No MXU push,
    # no bf16 cast of h3.
    v = jnp.sum(h * w4_ref[...], axis=0, keepdims=True)   # (1, TB) f32
    oT_ref[...] = v + b4_ref[...]                          # lane-dense store


def simple_critic_forward(states, actions, params, *, tb=None):
    """states: (B, num_agents, state_dim); actions: (B, num_agents, action_dim).

    params: PyTorch-layout weights w{i}: (out_features, in_features) f32,
            biases b{i}: (out_features,) f32.
    Returns (B, 1) f32, matching SimpleCritic.forward.
    """
    B = states.shape[0]
    s_flat = states.reshape(B, -1)               # (B, S_total) f32, batch-major
    a_flat = actions.reshape(B, -1)              # (B, A_total) f32, batch-major
    S_total = s_flat.shape[1]
    A_total = a_flat.shape[1]

    if tb is None:
        tb = _pick_batch_tile(B)
    assert tb % 128 == 0, "batch tile must be lane-dense (multiple of 128)"
    B_pad = _round_up(B, tb)
    grid = (B_pad // tb,)

    # Row-pad only (no transpose / cast pass over HBM); skipped when not needed.
    if B_pad != B:
        s_flat = jnp.pad(s_flat, ((0, B_pad - B), (0, 0)))
        a_flat = jnp.pad(a_flat, ((0, B_pad - B), (0, 0)))

    # Split layer-1 weight into states / actions parts (replaces the concat).
    w1 = params["w1"]
    w1s = w1[:, :S_total].astype(jnp.bfloat16)   # (256, S_total)
    w1a = w1[:, S_total:].astype(jnp.bfloat16)   # (256, A_total)
    w2 = params["w2"].astype(jnp.bfloat16)       # (128, 256)
    w3 = params["w3"].astype(jnp.bfloat16)       # (64, 128)
    w4 = params["w4"].reshape(-1, 1)             # (64, 1) f32 (VPU/XLU path)
    b1 = params["b1"].reshape(-1, 1)             # (256, 1) f32
    b2 = params["b2"].reshape(-1, 1)
    b3 = params["b3"].reshape(-1, 1)
    b4 = params["b4"].reshape(1, 1)              # (1, 1) f32

    # Constant block index -> weights/biases stay VMEM-resident across steps.
    def resident(shape):
        return pl.BlockSpec(shape, lambda i: (0, 0))

    outT = pl.pallas_call(
        simple_critic_kernel,
        out_shape=jax.ShapeDtypeStruct((1, B_pad), jnp.float32),
        grid=grid,
        in_specs=[
            pl.BlockSpec((tb, S_total), lambda i: (i, 0)),  # states tile
            pl.BlockSpec((tb, A_total), lambda i: (i, 0)),  # actions tile
            resident(w1s.shape), resident(w1a.shape), resident(b1.shape),
            resident(w2.shape), resident(b2.shape),
            resident(w3.shape), resident(b3.shape),
            resident(w4.shape), resident(b4.shape),
        ],
        out_specs=pl.BlockSpec((1, tb), lambda i: (0, i)),
        compiler_params=pltpu.CompilerParams(
            dimension_semantics=("parallel",),       # v7x: shard batch over TCs
            vmem_limit_bytes=32 * 1024 * 1024,       # safe for TB<=2048 on v5e
        ),
    )(s_flat, a_flat, w1s, w1a, b1, w2, b2, w3, b3, w4, b4)

    return outT[0, :B].reshape(B, 1)


def init_params(key, total_in):
    """PyTorch nn.Linear default init: U[-1/sqrt(fan_in), +1/sqrt(fan_in)],
    weights stored as (out_features, in_features)."""
    dims = [(total_in, 256), (256, 128), (128, 64), (64, 1)]
    params = {}
    for i, (fan_in, fan_out) in enumerate(dims, start=1):
        key, kw, kb = jax.random.split(key, 3)
        bound = 1.0 / (fan_in ** 0.5)
        params[f"w{i}"] = jax.random.uniform(
            kw, (fan_out, fan_in), jnp.float32, -bound, bound)
        params[f"b{i}"] = jax.random.uniform(
            kb, (fan_out,), jnp.float32, -bound, bound)
    return params


def _reference(states, actions, params):
    """Plain-JAX reference mirroring the kernel's bf16-input / f32-accumulate
    math (layer 4 stays f32, as in the kernel)."""
    B = states.shape[0]
    h = jnp.concatenate([states.reshape(B, -1), actions.reshape(B, -1)], axis=1)
    for i in (1, 2, 3):
        h = jnp.dot(h.astype(jnp.bfloat16),
                    params[f"w{i}"].T.astype(jnp.bfloat16),
                    preferred_element_type=jnp.float32) + params[f"b{i}"]
        h = jnp.maximum(h, 0.0)
    v = jnp.dot(h, params["w4"].T) + params["b4"]
    return v  # (B, 1)


if __name__ == "__main__":
    key = jax.random.PRNGKey(0)
    key, ks, ka = jax.random.split(key, 3)

    batch, state_dim, action_dim, num_agents = 8, 8, 4, 2
    total_in = (state_dim + action_dim) * num_agents  # 24

    states = jax.random.normal(ks, (batch, num_agents, state_dim), jnp.float32)
    actions = jax.random.normal(ka, (batch, num_agents, action_dim), jnp.float32)
    params = init_params(key, total_in)

    out = simple_critic_forward(states, actions, params)
    out = jax.block_until_ready(out)

    ref = _reference(states, actions, params)
    assert out.shape == (batch, 1)
    assert jnp.all(jnp.isfinite(out))
    assert jnp.allclose(out, ref, atol=2e-3, rtol=2e-3), (
        f"max abs err {jnp.max(jnp.abs(out - ref))}")

    print("KERNEL_OK")
</pallas_src>

<mosaic_0001>
module attributes {stable_mosaic.version = 11 : i64} {
  func.func @simple_critic_kernel(%arg0: i32, %arg1: memref<128x16xf32, #tpu.memory_space<vmem>>, %arg2: memref<128x8xf32, #tpu.memory_space<vmem>>, %arg3: memref<256x16xbf16, #tpu.memory_space<vmem>>, %arg4: memref<256x8xbf16, #tpu.memory_space<vmem>>, %arg5: memref<256x1xf32, #tpu.memory_space<vmem>>, %arg6: memref<128x256xbf16, #tpu.memory_space<vmem>>, %arg7: memref<128x1xf32, #tpu.memory_space<vmem>>, %arg8: memref<64x128xbf16, #tpu.memory_space<vmem>>, %arg9: memref<64x1xf32, #tpu.memory_space<vmem>>, %arg10: memref<64x1xf32, #tpu.memory_space<vmem>>, %arg11: memref<1x1xf32, #tpu.memory_space<vmem>>, %arg12: memref<1x128xf32, #tpu.memory_space<vmem>>) attributes {dimension_semantics = [#tpu.dimension_semantics<parallel>], iteration_bounds = array<i64: 1>, scalar_prefetch = 0 : i64, scratch_operands = 0 : i64, tpu.core_type = #tpu.core_type<tc>, window_params = [{transform_indices = @transform_0, window_bounds = array<i64: 128, 16>}, {transform_indices = @transform_1, window_bounds = array<i64: 128, 8>}, {pipeline_mode = #tpu.pipeline_mode<synchronous>, transform_indices = @transform_2, window_bounds = array<i64: 256, 16>}, {pipeline_mode = #tpu.pipeline_mode<synchronous>, transform_indices = @transform_3, window_bounds = array<i64: 256, 8>}, {pipeline_mode = #tpu.pipeline_mode<synchronous>, transform_indices = @transform_4, window_bounds = array<i64: 256, 1>}, {pipeline_mode = #tpu.pipeline_mode<synchronous>, transform_indices = @transform_5, window_bounds = array<i64: 128, 256>}, {pipeline_mode = #tpu.pipeline_mode<synchronous>, transform_indices = @transform_6, window_bounds = array<i64: 128, 1>}, {pipeline_mode = #tpu.pipeline_mode<synchronous>, transform_indices = @transform_7, window_bounds = array<i64: 64, 128>}, {pipeline_mode = #tpu.pipeline_mode<synchronous>, transform_indices = @transform_8, window_bounds = array<i64: 64, 1>}, {pipeline_mode = #tpu.pipeline_mode<synchronous>, transform_indices = @transform_9, window_bounds = array<i64: 64, 1>}, {pipeline_mode = #tpu.pipeline_mode<synchronous>, transform_indices = @transform_10, window_bounds = array<i64: 1, 1>}, {transform_indices = @transform_11, window_bounds = array<i64: 1, 128>}]} {
    %c0 = arith.constant 0 : index
    %c0_0 = arith.constant 0 : index
    %0 = vector.load %arg1[%c0, %c0_0] : memref<128x16xf32, #tpu.memory_space<vmem>>, vector<128x16xf32>
    %1 = arith.truncf %0 : vector<128x16xf32> to vector<128x16xbf16>
    %c0_1 = arith.constant 0 : index
    %c0_2 = arith.constant 0 : index
    %2 = vector.load %arg2[%c0_1, %c0_2] : memref<128x8xf32, #tpu.memory_space<vmem>>, vector<128x8xf32>
    %3 = arith.truncf %2 : vector<128x8xf32> to vector<128x8xbf16>
    %c0_3 = arith.constant 0 : index
    %c0_4 = arith.constant 0 : index
    %4 = vector.load %arg3[%c0_3, %c0_4] : memref<256x16xbf16, #tpu.memory_space<vmem>>, vector<256x16xbf16>
    %cst = arith.constant dense<0.000000e+00> : vector<256x128xf32>
    %5 = tpu.matmul %4, %1, %cst {dimension_numbers = #tpu.dot_dimension_numbers<[1], [1], [0], [0], [0, 0, 1, 0], [], []>} : vector<256x16xbf16>, vector<128x16xbf16>, vector<256x128xf32> -> vector<256x128xf32>
    %c0_5 = arith.constant 0 : index
    %c0_6 = arith.constant 0 : index
    %6 = vector.load %arg4[%c0_5, %c0_6] : memref<256x8xbf16, #tpu.memory_space<vmem>>, vector<256x8xbf16>
    %cst_7 = arith.constant dense<0.000000e+00> : vector<256x128xf32>
    %7 = tpu.matmul %6, %3, %cst_7 {dimension_numbers = #tpu.dot_dimension_numbers<[1], [1], [0], [0], [0, 0, 1, 0], [], []>} : vector<256x8xbf16>, vector<128x8xbf16>, vector<256x128xf32> -> vector<256x128xf32>
    %8 = arith.addf %5, %7 : vector<256x128xf32>
    %c0_8 = arith.constant 0 : index
    %c0_9 = arith.constant 0 : index
    %9 = vector.load %arg5[%c0_8, %c0_9] : memref<256x1xf32, #tpu.memory_space<vmem>>, vector<256x1xf32>
    %10 = vector.broadcast %9 : vector<256x1xf32> to vector<256x128xf32>
    %11 = arith.addf %8, %10 : vector<256x128xf32>
    %cst_10 = arith.constant 0.000000e+00 : f32
    %12 = vector.broadcast %cst_10 : f32 to vector<256x128xf32>
    %13 = arith.maximumf %11, %12 : vector<256x128xf32>
    %c0_11 = arith.constant 0 : index
    %c0_12 = arith.constant 0 : index
    %14 = vector.load %arg6[%c0_11, %c0_12] : memref<128x256xbf16, #tpu.memory_space<vmem>>, vector<128x256xbf16>
    %15 = arith.truncf %13 : vector<256x128xf32> to vector<256x128xbf16>
    %cst_13 = arith.constant dense<0.000000e+00> : vector<128x128xf32>
    %16 = tpu.matmul %14, %15, %cst_13 {dimension_numbers = #tpu.dot_dimension_numbers<[1], [0], [0], [1], [0, 0, 1, 1], [], []>} : vector<128x256xbf16>, vector<256x128xbf16>, vector<128x128xf32> -> vector<128x128xf32>
    %c0_14 = arith.constant 0 : index
    %c0_15 = arith.constant 0 : index
    %17 = vector.load %arg7[%c0_14, %c0_15] : memref<128x1xf32, #tpu.memory_space<vmem>>, vector<128x1xf32>
    %18 = vector.broadcast %17 : vector<128x1xf32> to vector<128x128xf32>
    %19 = arith.addf %16, %18 : vector<128x128xf32>
    %cst_16 = arith.constant 0.000000e+00 : f32
    %20 = vector.broadcast %cst_16 : f32 to vector<128x128xf32>
    %21 = arith.maximumf %19, %20 : vector<128x128xf32>
    %c0_17 = arith.constant 0 : index
    %c0_18 = arith.constant 0 : index
    %22 = vector.load %arg8[%c0_17, %c0_18] : memref<64x128xbf16, #tpu.memory_space<vmem>>, vector<64x128xbf16>
    %23 = arith.truncf %21 : vector<128x128xf32> to vector<128x128xbf16>
    %cst_19 = arith.constant dense<0.000000e+00> : vector<64x128xf32>
    %24 = tpu.matmul %22, %23, %cst_19 {dimension_numbers = #tpu.dot_dimension_numbers<[1], [0], [0], [1], [0, 0, 1, 1], [], []>} : vector<64x128xbf16>, vector<128x128xbf16>, vector<64x128xf32> -> vector<64x128xf32>
    %c0_20 = arith.constant 0 : index
    %c0_21 = arith.constant 0 : index
    %25 = vector.load %arg9[%c0_20, %c0_21] : memref<64x1xf32, #tpu.memory_space<vmem>>, vector<64x1xf32>
    %26 = vector.broadcast %25 : vector<64x1xf32> to vector<64x128xf32>
    %27 = arith.addf %24, %26 : vector<64x128xf32>
    %cst_22 = arith.constant 0.000000e+00 : f32
    %28 = vector.broadcast %cst_22 : f32 to vector<64x128xf32>
    %29 = arith.maximumf %27, %28 : vector<64x128xf32>
    %c0_23 = arith.constant 0 : index
    %c0_24 = arith.constant 0 : index
    %30 = vector.load %arg10[%c0_23, %c0_24] : memref<64x1xf32, #tpu.memory_space<vmem>>, vector<64x1xf32>
    %31 = vector.broadcast %30 : vector<64x1xf32> to vector<64x128xf32>
    %32 = arith.mulf %29, %31 : vector<64x128xf32>
    %cst_25 = arith.constant dense<0.000000e+00> : vector<128xf32>
    %33 = vector.multi_reduction <add>, %32, %cst_25 [0] : vector<64x128xf32> to vector<128xf32>
    %34 = vector.shape_cast %33 : vector<128xf32> to vector<1x128xf32>
    %c0_26 = arith.constant 0 : index
    %c0_27 = arith.constant 0 : index
    %35 = vector.load %arg11[%c0_26, %c0_27] : memref<1x1xf32, #tpu.memory_space<vmem>>, vector<1x1xf32>
    %36 = vector.broadcast %35 : vector<1x1xf32> to vector<1x128xf32>
    %37 = arith.addf %34, %36 : vector<1x128xf32>
    %c0_28 = arith.constant 0 : index
    %c0_29 = arith.constant 0 : index
    %38 = vector.load %arg12[%c0_28, %c0_29] : memref<1x128xf32, #tpu.memory_space<vmem>>, vector<1x128xf32>
    tpu.vector_store %arg12[%c0_28, %c0_29], %37 {strides = array<i32>} : memref<1x128xf32, #tpu.memory_space<vmem>>, vector<1x128xf32>,
    return
  }
  func.func @transform_0(%arg0: i32) -> (i32, i32) {
    %c0_i32 = arith.constant 0 : i32
    %c0_i32_0 = arith.constant 0 : i32
    return %arg0, %c0_i32 : i32, i32
  }
  func.func @transform_1(%arg0: i32) -> (i32, i32) {
    %c0_i32 = arith.constant 0 : i32
    %c0_i32_0 = arith.constant 0 : i32
    return %arg0, %c0_i32 : i32, i32
  }
  func.func @transform_2(%arg0: i32) -> (i32, i32) {
    %c0_i32 = arith.constant 0 : i32
    %c0_i32_0 = arith.constant 0 : i32
    %c0_i32_1 = arith.constant 0 : i32
    return %c0_i32, %c0_i32_0 : i32, i32
  }
  func.func @transform_3(%arg0: i32) -> (i32, i32) {
    %c0_i32 = arith.constant 0 : i32
    %c0_i32_0 = arith.constant 0 : i32
    %c0_i32_1 = arith.constant 0 : i32
    return %c0_i32, %c0_i32_0 : i32, i32
  }
  func.func @transform_4(%arg0: i32) -> (i32, i32) {
    %c0_i32 = arith.constant 0 : i32
    %c0_i32_0 = arith.constant 0 : i32
    %c0_i32_1 = arith.constant 0 : i32
    return %c0_i32, %c0_i32_0 : i32, i32
  }
  func.func @transform_5(%arg0: i32) -> (i32, i32) {
    %c0_i32 = arith.constant 0 : i32
    %c0_i32_0 = arith.constant 0 : i32
    %c0_i32_1 = arith.constant 0 : i32
    return %c0_i32, %c0_i32_0 : i32, i32
  }
  func.func @transform_6(%arg0: i32) -> (i32, i32) {
    %c0_i32 = arith.constant 0 : i32
    %c0_i32_0 = arith.constant 0 : i32
    %c0_i32_1 = arith.constant 0 : i32
    return %c0_i32, %c0_i32_0 : i32, i32
  }
  func.func @transform_7(%arg0: i32) -> (i32, i32) {
    %c0_i32 = arith.constant 0 : i32
    %c0_i32_0 = arith.constant 0 : i32
    %c0_i32_1 = arith.constant 0 : i32
    return %c0_i32, %c0_i32_0 : i32, i32
  }
  func.func @transform_8(%arg0: i32) -> (i32, i32) {
    %c0_i32 = arith.constant 0 : i32
    %c0_i32_0 = arith.constant 0 : i32
    %c0_i32_1 = arith.constant 0 : i32
    return %c0_i32, %c0_i32_0 : i32, i32
  }
  func.func @transform_9(%arg0: i32) -> (i32, i32) {
    %c0_i32 = arith.constant 0 : i32
    %c0_i32_0 = arith.constant 0 : i32
    %c0_i32_1 = arith.constant 0 : i32
    return %c0_i32, %c0_i32_0 : i32, i32
  }
  func.func @transform_10(%arg0: i32) -> (i32, i32) {
    %c0_i32 = arith.constant 0 : i32
    %c0_i32_0 = arith.constant 0 : i32
    %c0_i32_1 = arith.constant 0 : i32
    return %c0_i32, %c0_i32_0 : i32, i32
  }
  func.func @transform_11(%arg0: i32) -> (i32, i32) {
    %c0_i32 = arith.constant 0 : i32
    %c0_i32_0 = arith.constant 0 : i32
    return %c0_i32, %arg0 : i32, i32
  }
}

</mosaic_0001>

<bundles_post_ra>
// kernel: tpu_custom_call.1
= control target key start
LH: loop header
LB: loop body
LE: loop exit
PB: predicated region body
PF: predicated region fallthrough
CT: control target
= control target key end

     0   :  { %s2736_s0 = inlined_call_operand.vmem [shape: f32[128,16], index: 0, kind: input, shape index: {}]   ;;  %s2737_s1 = inlined_call_operand.vmem [shape: f32[128,8], index: 1, kind: input, shape index: {}]   ;;  %s2738_s2 = inlined_call_operand.vmem [shape: bf16[256,16], index: 2, kind: input, shape index: {}]   ;;  %s2739_s3 = inlined_call_operand.vmem [shape: bf16[256,8], index: 3, kind: input, shape index: {}]   ;;  %s2740_s4 = inlined_call_operand.vmem [shape: f32[256,1], index: 4, kind: input, shape index: {}]   ;;  %s2741_s5 = inlined_call_operand.vmem [shape: bf16[128,256], index: 5, kind: input, shape index: {}]   ;;  %s2742_s6 = inlined_call_operand.vmem [shape: f32[128,1], index: 6, kind: input, shape index: {}]   ;;  %s2743_s7 = inlined_call_operand.vmem [shape: bf16[64,128], index: 7, kind: input, shape index: {}]   ;;  %s2744_s8 = inlined_call_operand.vmem [shape: f32[64,1], index: 8, kind: input, shape index: {}]   ;;  %s2745_s9 = inlined_call_operand.vmem [shape: f32[64,1], index: 9, kind: input, shape index: {}]   ;;  %s2746_s10 = inlined_call_operand.<no memory space> [shape: f32[1,1], index: 10, kind: input, shape index: {}]   ;;  %s2747_s11 = inlined_call_operand.hbm [shape: f32[1,128], index: 11, kind: output, shape index: {}]  }
   0x1   :  { %v16_v0 = vstv %s2746_s10 }
   0x2   :  { %17 = vst [vmem:[#allocation2] sm:$0x1] %v16_v0 }
   0x3   :  { %v66_v1 = vld [vmem:[%s2737_s1] sm:$0xff]  ;;  %v67_v2 = vld [vmem:[%s2737_s1 + $0x8] sm:$0xff]  ;;  %vm234_vm0 = vcmask 64512   ;;  %v68_v3 = vld [vmem:[%s2737_s1 + $0x10] sm:$0xff]  ;;  %v2079_v6 = vmov 0   ;;  %vm548_vm1 = vcmask 130048  }
   0x4   :  { %v82_v4 = vpack.c.bf16 %v67_v2, %v66_v1  ;;  %v69_v5 = vld [vmem:[%s2737_s1 + $0x18] sm:$0xff]  ;;  %1993 = vset.pattern.permute.xlu0 %v2079_v6  ;;  %1994 = vset.pattern.permute.xlu1 %v2079_v6  ;;  %v70_v9 = vld [vmem:[%s2737_s1 + $0x20] sm:$0xff]  ;;  %v71_v10 = vld [vmem:[%s2737_s1 + $0x28] sm:$0xff] }
   0x5   :  { %v83_v7 = vpack.c.bf16 %v69_v5, %v68_v3  ;;  %v1995_v11 = vld [vmem:[%s2739_s3] sm:$0xff]   ;;  %v84_v13 = vpack.c.bf16 %v71_v10, %v70_v9  ;;  %v72_v14 = vld [vmem:[%s2737_s1 + $0x30] sm:$0xff]  ;;  %v73_v15 = vld [vmem:[%s2737_s1 + $0x38] sm:$0xff] }
   0x6   :  { %1975 = vmatprep.subr.msk.bf16.mxu0 %vm234_vm0, %v82_v4  ;;  %v284_v8 = vsel %vm234_vm0, %v82_v4, 0  ;;  %1839 = vmatprep.mubr.msk.bf16.mxu0 %vm234_vm0, %v1995_v11  ;;  %v798_v16 = vld [vmem:[%s2740_s4 + $0x80] sm:$0xff]  ;;  %v799_v17 = vld [vmem:[%s2740_s4 + $0x88] sm:$0xff]  ;;  %v85_v20 = vpack.c.bf16 %v73_v15, %v72_v14  ;;  %v800_v22 = vld [vmem:[%s2740_s4 + $0x90] sm:$0xff] }
   0x7   :  { %1824 = vmatpush3.bf16.xpose.msra.mxu0 %v284_v8  ;;  %v287_v12 = vsel %vm234_vm0, %v83_v7, 0  ;;  %896 = vperm.xlu0 %1993, %v798_v16   ;;  %v782_v18 = vld [vmem:[%s2740_s4] sm:$0xff]  ;;  %v290_v19 = vsel %vm234_vm0, %v84_v13, 0  ;;  %v783_v21 = vld [vmem:[%s2740_s4 + $0x8] sm:$0xff]  ;;  %v801_v25 = vld [vmem:[%s2740_s4 + $0x98] sm:$0xff] }
   0x8   :  { %1976 = vmatprep.subr.msk.bf16.mxu0 %vm234_vm0, %v83_v7  ;;  %816 = vperm.xlu1 %1994, %v782_v18   ;;  %v74_v23 = vld [vmem:[%s2737_s1 + $0x40] sm:$0xff]  ;;  %v75_v24 = vld [vmem:[%s2737_s1 + $0x48] sm:$0xff]  ;;  %v784_v26 = vld [vmem:[%s2740_s4 + $0x10] sm:$0xff]  ;;  %v293_v27 = vsel %vm234_vm0, %v85_v20, 0 }
   0x9   :  { %v86_v28 = vpack.c.bf16 %v75_v24, %v74_v23  ;;  %v785_v29 = vld [vmem:[%s2740_s4 + $0x18] sm:$0xff]  ;;  %v802_v30 = vld [vmem:[%s2740_s4 + $0xa0] sm:$0xff]  ;;  %v76_v31 = vld [vmem:[%s2737_s1 + $0x50] sm:$0xff] }
   0xa   :  { %v77_v32 = vld [vmem:[%s2737_s1 + $0x58] sm:$0xff]  ;;  %v803_v33 = vld [vmem:[%s2740_s4 + $0xa8] sm:$0xff]  ;;  %v786_v34 = vld [vmem:[%s2740_s4 + $0x20] sm:$0xff] }
   0xb   :  { %901 = vperm.xlu0 %1993, %v799_v17   ;;  %v296_v35 = vsel %vm234_vm0, %v86_v28, 0  ;;  %v87_v36 = vpack.c.bf16 %v77_v32, %v76_v31  ;;  %v787_v37 = vld [vmem:[%s2740_s4 + $0x28] sm:$0xff]  ;;  %v804_v38 = vld [vmem:[%s2740_s4 + $0xb0] sm:$0xff]  ;;  %v78_v39 = vld [vmem:[%s2737_s1 + $0x60] sm:$0xff] }
   0xc   :  { %821 = vperm.xlu1 %1994, %v783_v21   ;;  %v79_v40 = vld [vmem:[%s2737_s1 + $0x68] sm:$0xff]  ;;  %v805_v41 = vld [vmem:[%s2740_s4 + $0xb8] sm:$0xff]  ;;  %v788_v42 = vld [vmem:[%s2740_s4 + $0x30] sm:$0xff] }
   0xd   :  { %v299_v43 = vsel %vm234_vm0, %v87_v36, 0  ;;  %v88_v44 = vpack.c.bf16 %v79_v40, %v78_v39  ;;  %v789_v45 = vld [vmem:[%s2740_s4 + $0x38] sm:$0xff]  ;;  %v806_v46 = vld [vmem:[%s2740_s4 + $0xc0] sm:$0xff]  ;;  %v80_v47 = vld [vmem:[%s2737_s1 + $0x70] sm:$0xff] }
   0xe   :  { %v81_v48 = vld [vmem:[%s2737_s1 + $0x78] sm:$0xff]  ;;  %v807_v49 = vld [vmem:[%s2740_s4 + $0xc8] sm:$0xff]  ;;  %v790_v50 = vld [vmem:[%s2740_s4 + $0x40] sm:$0xff] }
   0xf   :  { %1826 = vmatpush3.bf16.xpose.msra.mxu0 %v287_v12  ;;  %906 = vperm.xlu0 %1993, %v800_v22   ;;  %v302_v51 = vsel %vm234_vm0, %v88_v44, 0  ;;  %v89_v52 = vpack.c.bf16 %v81_v48, %v80_v47  ;;  %v791_v53 = vld [vmem:[%s2740_s4 + $0x48] sm:$0xff]  ;;  %v808_v54 = vld [vmem:[%s2740_s4 + $0xd0] sm:$0xff]  ;;  %v42_v55 = vld [vmem:[%s2736_s0] sm:$0xff] }
  0x10   :  { %1977 = vmatprep.subr.msk.bf16.mxu0 %vm234_vm0, %v84_v13  ;;  %911 = vperm.xlu1 %1994, %v801_v25   ;;  %v43_v56 = vld [vmem:[%s2736_s0 + $0x8] sm:$0xff]  ;;  %v809_v57 = vld [vmem:[%s2740_s4 + $0xd8] sm:$0xff]  ;;  %v792_v58 = vld [vmem:[%s2740_s4 + $0x50] sm:$0xff] }
  0x11   :  { %v305_v59 = vsel %vm234_vm0, %v89_v52, 0  ;;  %v58_v60 = vpack.c.bf16 %v43_v56, %v42_v55  ;;  %v793_v61 = vld [vmem:[%s2740_s4 + $0x58] sm:$0xff]  ;;  %v810_v62 = vld [vmem:[%s2740_s4 + $0xe0] sm:$0xff]  ;;  %v44_v63 = vld [vmem:[%s2736_s0 + $0x10] sm:$0xff] }
  0x12   :  { %v45_v0 = vld [vmem:[%s2736_s0 + $0x18] sm:$0xff]  ;;  %v811_v1 = vld [vmem:[%s2740_s4 + $0xe8] sm:$0xff]  ;;  %v1997_v3 = vld [vmem:[%s2739_s3 + $0x10] sm:$0xff]  }
  0x13   :  { %826 = vperm.xlu0 %1993, %v784_v26   ;;  %v1996_v2 = vld [vmem:[%s2739_s3 + $0x8] sm:$0xff]   ;;  %v794_v4 = vld [vmem:[%s2740_s4 + $0x60] sm:$0xff]  ;;  %v598_v6 = vsel %vm548_vm1, %v58_v60, 0  ;;  %v59_v7 = vpack.c.bf16 %v45_v0, %v44_v63  ;;  %v812_v8 = vld [vmem:[%s2740_s4 + $0xf0] sm:$0xff] }
  0x14   :  { %831 = vperm.xlu1 %1994, %v785_v29   ;;  %v795_v5 = vld [vmem:[%s2740_s4 + $0x68] sm:$0xff]  ;;  %v46_v9 = vld [vmem:[%s2736_s0 + $0x20] sm:$0xff]  ;;  %v813_v11 = vld [vmem:[%s2740_s4 + $0xf8] sm:$0xff] }
  0x15   :  { %v47_v10 = vld [vmem:[%s2736_s0 + $0x28] sm:$0xff]  ;;  %v1998_v12 = vld [vmem:[%s2739_s3 + $0x18] sm:$0xff]   ;;  %v1999_v13 = vld [vmem:[%s2739_s3 + $0x20] sm:$0xff]  }
  0x16   :  { %v796_v14 = vld [vmem:[%s2740_s4 + $0x70] sm:$0xff] }
  0x17   :  { %1828 = vmatpush3.bf16.xpose.msra.mxu0 %v290_v19  ;;  %916 = vperm.xlu0 %1993, %v802_v30  }
  0x18   :  { %1978 = vmatprep.subr.msk.bf16.mxu0 %vm234_vm0, %v85_v20  ;;  %921 = vperm.xlu1 %1994, %v803_v33  }
  0x1b   :  { %836 = vperm.xlu0 %1993, %v786_v34  }
  0x1c   :  { %841 = vperm.xlu1 %1994, %v787_v37  }
  0x1f   :  { %1830 = vmatpush3.bf16.xpose.msra.mxu0 %v293_v27  ;;  %926 = vperm.xlu0 %1993, %v804_v38  }
  0x20   :  { %1979 = vmatprep.subr.msk.bf16.mxu0 %vm234_vm0, %v86_v28  ;;  %931 = vperm.xlu1 %1994, %v805_v41  }
  0x23   :  { %846 = vperm.xlu0 %1993, %v788_v42  }
  0x24   :  { %851 = vperm.xlu1 %1994, %v789_v45  }
  0x27   :  { %1832 = vmatpush3.bf16.xpose.msra.mxu0 %v296_v35  ;;  %936 = vperm.xlu0 %1993, %v806_v46  }
  0x28   :  { %1980 = vmatprep.subr.msk.bf16.mxu0 %vm234_vm0, %v87_v36  ;;  %941 = vperm.xlu1 %1994, %v807_v49  }
  0x2b   :  { %856 = vperm.xlu0 %1993, %v790_v50  }
  0x2c   :  { %861 = vperm.xlu1 %1994, %v791_v53  }
  0x2f   :  { %1834 = vmatpush3.bf16.xpose.msra.mxu0 %v299_v43  ;;  %946 = vperm.xlu0 %1993, %v808_v54  }
  0x30   :  { %1981 = vmatprep.subr.msk.bf16.mxu0 %vm234_vm0, %v88_v44  ;;  %951 = vperm.xlu1 %1994, %v809_v57  }
  0x33   :  { %866 = vperm.xlu0 %1993, %v792_v58  }
  0x34   :  { %871 = vperm.xlu1 %1994, %v793_v61  }
  0x37   :  { %1836 = vmatpush3.bf16.xpose.msra.mxu0 %v302_v51  ;;  %956 = vperm.xlu0 %1993, %v810_v62  }
  0x38   :  { %1982 = vmatprep.subr.msk.bf16.mxu0 %vm234_vm0, %v89_v52  ;;  %961 = vperm.xlu1 %1994, %v811_v1  }
  0x3b   :  { %876 = vperm.xlu0 %1993, %v794_v4  }
  0x3c   :  { %881 = vperm.xlu1 %1994, %v795_v5  }
  0x3f   :  { %1838 = vmatpush3.bf16.xpose.msra.mxu0 %v305_v59  ;;  %966 = vperm.xlu0 %1993, %v812_v8  }
  0x40   :  { %1983 = vmatprep.subr.msk.bf16.mxu0 %vm548_vm1, %v58_v60 }
  0x46   :  { %1840 = vmatmul.mubr.msk.bf16.vlgmr.msra.gmra.mrb[0].mxu0 %vm234_vm0, %v1996_v2 }
  0x47   :  { %1872 = vmatpush3.bf16.xpose.msra.mxu0 %v598_v6  ;;  %1843 = vmatprep.mubr.msk.bf16.mxu0 %vm234_vm0, %v1997_v3 }
  0x48   :  { %1984 = vmatprep.subr.msk.bf16.mxu0 %vm548_vm1, %v59_v7 }
  0x49   :  { %18 = vsyncpa [#allocation4], 0  ;;  %v601_v15 = vsel %vm548_vm1, %v59_v7, 0  ;;  %v60_v16 = vpack.c.bf16 %v47_v10, %v46_v9  ;;  %971 = vperm.xlu1 %1994, %v813_v11   ;;  %v797_v17 = vld [vmem:[%s2740_s4 + $0x78] sm:$0xff]  ;;  %886 = vperm.xlu0 %1993, %v796_v14   ;;  %v1070_v18 = vld [vmem:[%s2742_s6] sm:$0xff] }
  0x4a   :  { %v48_v19 = vld [vmem:[%s2736_s0 + $0x30] sm:$0xff]  ;;  %v49_v20 = vld [vmem:[%s2736_s0 + $0x38] sm:$0xff]  ;;  %v1071_v21 = vld [vmem:[%s2742_s6 + $0x8] sm:$0xff] }
  0x4b   :  { %v2000_v22 = vld [vmem:[%s2739_s3 + $0x28] sm:$0xff]   ;;  %v2001_v23 = vld [vmem:[%s2739_s3 + $0x30] sm:$0xff]   ;;  %v604_v25 = vsel %vm548_vm1, %v60_v16, 0  ;;  %v61_v26 = vpack.c.bf16 %v49_v20, %v48_v19  ;;  %v1073_v27 = vld [vmem:[%s2742_s6 + $0x18] sm:$0xff] }
  0x4c   :  { %v1072_v24 = vld [vmem:[%s2742_s6 + $0x10] sm:$0xff]  ;;  %v1074_v28 = vld [vmem:[%s2742_s6 + $0x20] sm:$0xff]  ;;  %v51_v30 = vld [vmem:[%s2736_s0 + $0x48] sm:$0xff] }
  0x4d   :  { %891 = vperm.xlu1 %1994, %v797_v17   ;;  %1088 = vperm.xlu0 %1993, %v1070_v18   ;;  %v50_v29 = vld [vmem:[%s2736_s0 + $0x40] sm:$0xff]  ;;  %v1075_v31 = vld [vmem:[%s2742_s6 + $0x28] sm:$0xff]  ;;  %v2002_v32 = vld [vmem:[%s2739_s3 + $0x38] sm:$0xff]   ;;  %v607_v35 = vsel %vm548_vm1, %v61_v26, 0 }
  0x4e   :  { %1844 = vmatmul.mubr.msk.bf16.gmra.mrb[4].mxu0 %vm234_vm0, %v1998_v12  ;;  %v2003_v33 = vld [vmem:[%s2739_s3 + $0x40] sm:$0xff]   ;;  %v1076_v34 = vld [vmem:[%s2742_s6 + $0x30] sm:$0xff]  ;;  %v62_v36 = vpack.c.bf16 %v51_v30, %v50_v29  ;;  %v1077_v37 = vld [vmem:[%s2742_s6 + $0x38] sm:$0xff] }
  0x4f   :  { %1874 = vmatpush3.bf16.xpose.msra.mxu0 %v601_v15  ;;  %1847 = vmatprep.mubr.msk.bf16.mxu0 %vm234_vm0, %v1999_v13  ;;  %v1078_v38 = vld [vmem:[%s2742_s6 + $0x40] sm:$0xff]  ;;  %v52_v39 = vld [vmem:[%s2736_s0 + $0x50] sm:$0xff]  ;;  %v53_v40 = vld [vmem:[%s2736_s0 + $0x58] sm:$0xff] }
  0x50   :  { %1985 = vmatprep.subr.msk.bf16.mxu0 %vm548_vm1, %v60_v16  ;;  %v1079_v41 = vld [vmem:[%s2742_s6 + $0x48] sm:$0xff]  ;;  %v2005_v43 = vld [vmem:[%s2739_s3 + $0x50] sm:$0xff]   ;;  %v610_v45 = vsel %vm548_vm1, %v62_v36, 0  ;;  %v63_v46 = vpack.c.bf16 %v53_v40, %v52_v39  ;;  %v1081_v47 = vld [vmem:[%s2742_s6 + $0x58] sm:$0xff] }
  0x51   :  { %1093 = vperm.xlu1 %1994, %v1071_v21   ;;  %1098 = vperm.xlu0 %1993, %v1072_v24   ;;  %v2004_v42 = vld [vmem:[%s2739_s3 + $0x48] sm:$0xff]   ;;  %v1080_v44 = vld [vmem:[%s2742_s6 + $0x50] sm:$0xff]  ;;  %v1082_v48 = vld [vmem:[%s2742_s6 + $0x60] sm:$0xff] }
  0x52   :  { %v54_v49 = vld [vmem:[%s2736_s0 + $0x60] sm:$0xff]  ;;  %v55_v50 = vld [vmem:[%s2736_s0 + $0x68] sm:$0xff]  ;;  %v2006_v52 = vld [vmem:[%s2739_s3 + $0x58] sm:$0xff]   ;;  %v613_v55 = vsel %vm548_vm1, %v63_v46, 0 }
  0x53   :  { %v1083_v51 = vld [vmem:[%s2742_s6 + $0x68] sm:$0xff]  ;;  %v2007_v53 = vld [vmem:[%s2739_s3 + $0x60] sm:$0xff]   ;;  %v1084_v54 = vld [vmem:[%s2742_s6 + $0x70] sm:$0xff]  ;;  %v64_v56 = vpack.c.bf16 %v55_v50, %v54_v49 }
  0x54   :  { %v1085_v57 = vld [vmem:[%s2742_s6 + $0x78] sm:$0xff]  ;;  %v1375_v58 = vld [vmem:[%s2744_s8] sm:$0xff]  ;;  %v56_v59 = vld [vmem:[%s2736_s0 + $0x70] sm:$0xff] }
  0x55   :  { %1103 = vperm.xlu1 %1994, %v1073_v27   ;;  %1108 = vperm.xlu0 %1993, %v1074_v28   ;;  %v57_v60 = vld [vmem:[%s2736_s0 + $0x78] sm:$0xff]  ;;  %v1376_v61 = vld [vmem:[%s2744_s8 + $0x8] sm:$0xff]  ;;  %v2009_v63 = vld [vmem:[%s2739_s3 + $0x70] sm:$0xff]   ;;  %v616_v1 = vsel %vm548_vm1, %v64_v56, 0 }
  0x56   :  { %1848 = vmatmul.mubr.msk.bf16.gmra.mrb[8].mxu0 %vm234_vm0, %v2000_v22  ;;  %v2008_v62 = vld [vmem:[%s2739_s3 + $0x68] sm:$0xff]   ;;  %v1377_v0 = vld [vmem:[%s2744_s8 + $0x10] sm:$0xff]  ;;  %v65_v2 = vpack.c.bf16 %v57_v60, %v56_v59  ;;  %v1378_v3 = vld [vmem:[%s2744_s8 + $0x18] sm:$0xff] }
  0x57   :  { %1876 = vmatpush3.bf16.xpose.msra.mxu0 %v604_v25  ;;  %1851 = vmatprep.mubr.msk.bf16.mxu0 %vm234_vm0, %v2001_v23  ;;  %v1520_v4 = vld [vmem:[%s2745_s9] sm:$0xff]  ;;  %v1521_v5 = vld [vmem:[%s2745_s9 + $0x8] sm:$0xff]  ;;  %v2010_v6 = vld [vmem:[%s2739_s3 + $0x78] sm:$0xff]  }
  0x58   :  { %1986 = vmatprep.subr.msk.bf16.mxu0 %vm548_vm1, %v61_v26  ;;  %v2011_v7 = vld [vmem:[%s2738_s2] sm:$0xff]   ;;  %v619_v9 = vsel %vm548_vm1, %v65_v2, 0  ;;  %v1522_v10 = vld [vmem:[%s2745_s9 + $0x10] sm:$0xff]  ;;  %v1380_v11 = vld [vmem:[%s2744_s8 + $0x28] sm:$0xff] }
  0x59   :  { %1113 = vperm.xlu1 %1994, %v1075_v31   ;;  %1118 = vperm.xlu0 %1993, %v1076_v34   ;;  %v1379_v8 = vld [vmem:[%s2744_s8 + $0x20] sm:$0xff]  ;;  %v1523_v12 = vld [vmem:[%s2745_s9 + $0x18] sm:$0xff]  ;;  %v2012_v13 = vld [vmem:[%s2738_s2 + $0x8] sm:$0xff]  }
  0x5a   :  { %v2013_v14 = vld [vmem:[%s2738_s2 + $0x10] sm:$0xff]   ;;  %v1524_v16 = vld [vmem:[%s2745_s9 + $0x20] sm:$0xff]  ;;  %v1382_v17 = vld [vmem:[%s2744_s8 + $0x38] sm:$0xff] }
  0x5b   :  { %v1381_v15 = vld [vmem:[%s2744_s8 + $0x30] sm:$0xff]  ;;  %v1525_v18 = vld [vmem:[%s2745_s9 + $0x28] sm:$0xff]  ;;  %v2014_v19 = vld [vmem:[%s2738_s2 + $0x18] sm:$0xff]  }
  0x5c   :  { %v2015_v20 = vld [vmem:[%s2738_s2 + $0x20] sm:$0xff]   ;;  %v1526_v21 = vld [vmem:[%s2745_s9 + $0x30] sm:$0xff]  ;;  %v1527_v22 = vld [vmem:[%s2745_s9 + $0x38] sm:$0xff] }
  0x5d   :  { %1123 = vperm.xlu1 %1994, %v1077_v37   ;;  %1128 = vperm.xlu0 %1993, %v1078_v38   ;;  %v1589_v23 = vld [vmem:[#allocation2] sm:$0x1]  ;;  %v2016_v24 = vld [vmem:[%s2738_s2 + $0x28] sm:$0xff]   ;;  %v2017_v25 = vld [vmem:[%s2738_s2 + $0x30] sm:$0xff]  }
  0x5e   :  { %1852 = vmatmul.mubr.msk.bf16.gmra.mrb[12].mxu0 %vm234_vm0, %v2002_v32  ;;  %v2018_v26 = vld [vmem:[%s2738_s2 + $0x38] sm:$0xff]   ;;  %v2019_v27 = vld [vmem:[%s2738_s2 + $0x40] sm:$0xff]   ;;  %v2020_v28 = vld [vmem:[%s2738_s2 + $0x48] sm:$0xff]  }
  0x5f   :  { %1878 = vmatpush3.bf16.xpose.msra.mxu0 %v607_v35  ;;  %1855 = vmatprep.mubr.msk.bf16.mxu0 %vm234_vm0, %v2003_v33  ;;  %v2021_v29 = vld [vmem:[%s2738_s2 + $0x50] sm:$0xff]   ;;  %v2022_v30 = vld [vmem:[%s2738_s2 + $0x58] sm:$0xff]   ;;  %v2023_v31 = vld [vmem:[%s2738_s2 + $0x60] sm:$0xff]  }
  0x60   :  { %1987 = vmatprep.subr.msk.bf16.mxu0 %vm548_vm1, %v62_v36  ;;  %v2024_v32 = vld [vmem:[%s2738_s2 + $0x68] sm:$0xff]   ;;  %v2025_v33 = vld [vmem:[%s2738_s2 + $0x70] sm:$0xff]   ;;  %v2026_v34 = vld [vmem:[%s2738_s2 + $0x78] sm:$0xff]  }
  0x61   :  { %1133 = vperm.xlu1 %1994, %v1079_v41   ;;  %1138 = vperm.xlu0 %1993, %v1080_v44   ;;  %v2029_v39 = vld [vmem:[%s2741_s5 + $0x4] ss:$8 sps:$4 sm:$0xff]  }
  0x62   :  { %1278 = vmatprep.mubr.bf16.mxu1 %v2029_v39 }
  0x65   :  { %1143 = vperm.xlu1 %1994, %v1081_v47   ;;  %1148 = vperm.xlu0 %1993, %v1082_v48  }
  0x66   :  { %1856 = vmatmul.mubr.msk.bf16.gmra.mrb[16].mxu0 %vm234_vm0, %v2004_v42 }
  0x67   :  { %1880 = vmatpush3.bf16.xpose.msra.mxu0 %v610_v45  ;;  %1859 = vmatprep.mubr.msk.bf16.mxu0 %vm234_vm0, %v2005_v43 }
  0x68   :  { %1988 = vmatprep.subr.msk.bf16.mxu0 %vm548_vm1, %v63_v46 }
  0x69   :  { %1153 = vperm.xlu1 %1994, %v1083_v51   ;;  %1158 = vperm.xlu0 %1993, %v1084_v54  }
  0x6d   :  { %1163 = vperm.xlu1 %1994, %v1085_v57   ;;  %1385 = vperm.xlu0 %1993, %v1375_v58  }
  0x6e   :  { %1860 = vmatmul.mubr.msk.bf16.gmra.mrb[20].mxu0 %vm234_vm0, %v2006_v52 }
  0x6f   :  { %1882 = vmatpush3.bf16.xpose.msra.mxu0 %v613_v55  ;;  %1863 = vmatprep.mubr.msk.bf16.mxu0 %vm234_vm0, %v2007_v53 }
  0x70   :  { %1989 = vmatprep.subr.msk.bf16.mxu0 %vm548_vm1, %v64_v56 }
  0x71   :  { %1390 = vperm.xlu1 %1994, %v1376_v61   ;;  %1395 = vperm.xlu0 %1993, %v1377_v0  }
  0x75   :  { %1400 = vperm.xlu1 %1994, %v1378_v3   ;;  %1530 = vperm.xlu0 %1993, %v1520_v4  }
  0x76   :  { %1864 = vmatmul.mubr.msk.bf16.gmra.mrb[24].mxu0 %vm234_vm0, %v2008_v62 }
  0x77   :  { %1884 = vmatpush3.bf16.xpose.msra.mxu0 %v616_v1  ;;  %1867 = vmatprep.mubr.msk.bf16.mxu0 %vm234_vm0, %v2009_v63 }
  0x78   :  { %1990 = vmatprep.subr.msk.bf16.mxu0 %vm548_vm1, %v65_v2 }
  0x79   :  { %1535 = vperm.xlu1 %1994, %v1521_v5   ;;  %1405 = vperm.xlu0 %1993, %v1379_v8  }
  0x7d   :  { %1540 = vperm.xlu1 %1994, %v1522_v10   ;;  %1410 = vperm.xlu0 %1993, %v1380_v11  }
  0x7e   :  { %1868 = vmatmul.mubr.msk.bf16.gmra.mrb[28].mxu0 %vm234_vm0, %v2010_v6 }
  0x7f   :  { %1886 = vmatpush3.bf16.xpose.msra.mxu0 %v619_v9  ;;  %1887 = vmatprep.mubr.msk.bf16.mxu0 %vm548_vm1, %v2011_v7 }
  0x81   :  { %1545 = vperm.xlu1 %1994, %v1523_v12   ;;  %1415 = vperm.xlu0 %1993, %v1381_v15  }
  0x85   :  { %1550 = vperm.xlu1 %1994, %v1524_v16   ;;  %1420 = vperm.xlu0 %1993, %v1382_v17  }
  0x86   :  { %1888 = vmatmul.mubr.msk.bf16.vlgmr.msra.gmra.mrb[0].mxu0 %vm548_vm1, %v2012_v13  ;;  %v2592_v35 = vpop.permute.xlu0 %896 }
  0x87   :  { %1891 = vmatprep.mubr.msk.bf16.mxu0 %vm548_vm1, %v2013_v14  ;;  %v817_v36 = vpop.permute.xlu1 %816 }
  0x89   :  { %1555 = vperm.xlu1 %1994, %v1525_v18   ;;  %1560 = vperm.xlu0 %1993, %v1526_v21  }
  0x8a   :  { %v2594_v37 = vpop.permute.xlu0 %901 }
  0x8b   :  { %v822_v38 = vpop.permute.xlu1 %821 }
  0x8d   :  { %1565 = vperm.xlu1 %1994, %v1527_v22   ;;  %1592 = vperm.xlu0 %1993, %v1589_v23  }
  0x8e   :  { %1892 = vmatmul.mubr.msk.bf16.gmra.mrb[4].mxu0 %vm548_vm1, %v2014_v19  ;;  %v2599_v40 = vpop.permute.xlu0 %906 }
  0x8f   :  { %1895 = vmatprep.mubr.msk.bf16.mxu0 %vm548_vm1, %v2015_v20  ;;  %v2601_v41 = vpop.permute.xlu1 %911 }
  0x92   :  { %v827_v42 = vpop.permute.xlu0 %826 }
  0x93   :  { %v832_v43 = vpop.permute.xlu1 %831 }
  0x96   :  { %1896 = vmatmul.mubr.msk.bf16.gmra.mrb[8].mxu0 %vm548_vm1, %v2016_v24  ;;  %v2603_v44 = vpop.permute.xlu0 %916 }
  0x97   :  { %1899 = vmatprep.mubr.msk.bf16.mxu0 %vm548_vm1, %v2017_v25  ;;  %v2605_v45 = vpop.permute.xlu1 %921 }
  0x9a   :  { %v837_v46 = vpop.permute.xlu0 %836 }
  0x9b   :  { %v842_v47 = vpop.permute.xlu1 %841 }
  0x9e   :  { %1900 = vmatmul.mubr.msk.bf16.gmra.mrb[12].mxu0 %vm548_vm1, %v2018_v26  ;;  %v2607_v48 = vpop.permute.xlu0 %926 }
  0x9f   :  { %1903 = vmatprep.mubr.msk.bf16.mxu0 %vm548_vm1, %v2019_v27  ;;  %v2609_v49 = vpop.permute.xlu1 %931 }
  0xa2   :  { %v847_v50 = vpop.permute.xlu0 %846 }
  0xa3   :  { %v852_v51 = vpop.permute.xlu1 %851 }
  0xa6   :  { %1904 = vmatmul.mubr.msk.bf16.gmra.mrb[16].mxu0 %vm548_vm1, %v2020_v28  ;;  %v2611_v52 = vpop.permute.xlu0 %936 }
  0xa7   :  { %1907 = vmatprep.mubr.msk.bf16.mxu0 %vm548_vm1, %v2021_v29  ;;  %v2613_v53 = vpop.permute.xlu1 %941 }
  0xaa   :  { %v857_v54 = vpop.permute.xlu0 %856 }
  0xab   :  { %v862_v55 = vpop.permute.xlu1 %861 }
  0xae   :  { %1908 = vmatmul.mubr.msk.bf16.gmra.mrb[20].mxu0 %vm548_vm1, %v2022_v30  ;;  %v2615_v56 = vpop.permute.xlu0 %946 }
  0xaf   :  { %1911 = vmatprep.mubr.msk.bf16.mxu0 %vm548_vm1, %v2023_v31  ;;  %v2617_v57 = vpop.permute.xlu1 %951 }
  0xb2   :  { %v867_v58 = vpop.permute.xlu0 %866 }
  0xb3   :  { %v872_v62 = vpop.permute.xlu1 %871 }
  0xb6   :  { %1912 = vmatmul.mubr.msk.bf16.gmra.mrb[24].mxu0 %vm548_vm1, %v2024_v32  ;;  %v2619_v6 = vpop.permute.xlu0 %956 }
  0xb7   :  { %1915 = vmatprep.mubr.msk.bf16.mxu0 %vm548_vm1, %v2025_v33  ;;  %v2623_v10 = vpop.permute.xlu1 %961 }
  0xba   :  { %v877_v19 = vpop.permute.xlu0 %876 }
  0xbb   :  { %v882_v23 = vpop.permute.xlu1 %881 }
  0xbe   :  { %1916 = vmatmul.mubr.msk.bf16.gmra.mrb[28].mxu0 %vm548_vm1, %v2026_v34  ;;  %v2631_v31 = vpop.permute.xlu0 %966 }
 0x159   :  { %v1889_v59 = vpop.f32.mrb[0].mxu0 }
 0x15a   :  { %v976_v60 = vadd.f32 %v1889_v59, %v827_v42  ;;  %v655_v61 = vpop.f32.mrb[1].mxu0 }
 0x15b   :  { %v974_v63 = vadd.f32 %v817_v36, %v655_v61  ;;  %v1890_v0 = vpop.f32.mrb[2].mxu0 }
 0x15c   :  { %v977_v1 = vadd.f32 %v1890_v0, %v832_v43  ;;  %v658_v2 = vpop.f32.mrb[3].mxu0  ;;  %v1008_v4 = vmax.f32 %v976_v60, 0.0 }
 0x15d   :  { %v975_v3 = vadd.f32 %v822_v38, %v658_v2  ;;  %v1006_v7 = vmax.f32 %v974_v63, 0.0  ;;  %v2633_v38 = vpop.permute.xlu1 %971 }
 0x15e   :  { %v1009_v5 = vmax.f32 %v977_v1, 0.0 }
 0x15f   :  { %v1007_v8 = vmax.f32 %v975_v3, 0.0 }
 0x160   :  { %v2621_v9 = vpack.c.bf16 %v1009_v5, %v1008_v4 }
 0x161   :  { %v1893_v11 = vpop.f32.mrb[4].mxu0  ;;  %v2625_v12 = vpack.c.bf16 %v1007_v8, %v1006_v7  ;;  %v892_v63 = vpop.permute.xlu1 %891 }
 0x162   :  { %v980_v13 = vadd.f32 %v1893_v11, %v847_v50  ;;  %v671_v14 = vpop.f32.mrb[5].mxu0 }
 0x163   :  { %v978_v15 = vadd.f32 %v837_v46, %v671_v14  ;;  %v1894_v16 = vpop.f32.mrb[6].mxu0 }
 0x164   :  { %v981_v17 = vadd.f32 %v1894_v16, %v852_v51  ;;  %v674_v18 = vpop.f32.mrb[7].mxu0  ;;  %v1012_v21 = vmax.f32 %v980_v13, 0.0  ;;  %v887_v51 = vpop.permute.xlu0 %886 }
 0x165   :  { %v979_v20 = vadd.f32 %v842_v47, %v674_v18  ;;  %v1010_v24 = vmax.f32 %v978_v15, 0.0 }
 0x166   :  { %v1013_v22 = vmax.f32 %v981_v17, 0.0 }
 0x167   :  { %v1011_v25 = vmax.f32 %v979_v20, 0.0 }
 0x168   :  { %v2627_v26 = vpack.c.bf16 %v1013_v22, %v1012_v21 }
 0x169   :  { %v2629_v27 = vpack.c.bf16 %v1011_v25, %v1010_v24  ;;  %v1897_v28 = vpop.f32.mrb[8].mxu0 }
 0x16a   :  { %v984_v29 = vadd.f32 %v1897_v28, %v867_v58  ;;  %v687_v30 = vpop.f32.mrb[9].mxu0 }
 0x16b   :  { %v982_v32 = vadd.f32 %v857_v54, %v687_v30  ;;  %v1898_v33 = vpop.f32.mrb[10].mxu0 }
 0x16c   :  { %v985_v34 = vadd.f32 %v1898_v33, %v872_v62  ;;  %v690_v36 = vpop.f32.mrb[11].mxu0  ;;  %v1016_v42 = vmax.f32 %v984_v29, 0.0 }
 0x16d   :  { %v983_v39 = vadd.f32 %v862_v55, %v690_v36  ;;  %v1014_v46 = vmax.f32 %v982_v32, 0.0 }
 0x16e   :  { %v1017_v43 = vmax.f32 %v985_v34, 0.0 }
 0x16f   :  { %v1015_v47 = vmax.f32 %v983_v39, 0.0 }
 0x170   :  { %v2635_v50 = vpack.c.bf16 %v1017_v43, %v1016_v42 }
 0x171   :  { %v2637_v59 = vpack.c.bf16 %v1015_v47, %v1014_v46  ;;  %v1901_v58 = vpop.f32.mrb[12].mxu0 }
 0x172   :  { %v988_v60 = vadd.f32 %v1901_v58, %v887_v51  ;;  %v703_v61 = vpop.f32.mrb[13].mxu0 }
 0x173   :  { %v986_v54 = vadd.f32 %v877_v19, %v703_v61  ;;  %v1902_v0 = vpop.f32.mrb[14].mxu0 }
 0x174   :  { %v989_v62 = vadd.f32 %v1902_v0, %v892_v63  ;;  %v706_v1 = vpop.f32.mrb[15].mxu0  ;;  %v1020_v3 = vmax.f32 %v988_v60, 0.0 }
 0x175   :  { %v987_v2 = vadd.f32 %v882_v23, %v706_v1  ;;  %v1018_v4 = vmax.f32 %v986_v54, 0.0 }
 0x176   :  { %v1021_v55 = vmax.f32 %v989_v62, 0.0 }
 0x177   :  { %v1019_v5 = vmax.f32 %v987_v2, 0.0 }
 0x178   :  { %v2639_v7 = vpack.c.bf16 %v1021_v55, %v1020_v3 }
 0x179   :  { %v2641_v8 = vpack.c.bf16 %v1019_v5, %v1018_v4  ;;  %v1905_v11 = vpop.f32.mrb[16].mxu0  ;;  %v2036_v5 = vld [vmem:[%s2741_s5 + $0x34] ss:$8 sps:$4 sm:$0xff]  }
 0x17a   :  { %v992_v13 = vadd.f32 %v1905_v11, %v2599_v40  ;;  %v719_v14 = vpop.f32.mrb[17].mxu0  ;;  %v2041_v11 = vld [vmem:[%s2741_s5 + $0x40] ss:$8 sps:$4 sm:$0xff]  }
 0x17b   :  { %v990_v15 = vadd.f32 %v2592_v35, %v719_v14  ;;  %v1906_v16 = vpop.f32.mrb[18].mxu0  ;;  %v2044_v14 = vld [vmem:[%s2741_s5 + $0x50] ss:$8 sps:$4 sm:$0xff]  }
 0x17c   :  { %v993_v17 = vadd.f32 %v1906_v16, %v2601_v41  ;;  %v722_v18 = vpop.f32.mrb[19].mxu0  ;;  %v1024_v20 = vmax.f32 %v992_v13, 0.0  ;;  %v2042_v13 = vld [vmem:[%s2741_s5 + $0x54] ss:$8 sps:$4 sm:$0xff]   ;;  %v2047_v16 = vld [vmem:[%s2741_s5 + $0x60] ss:$8 sps:$4 sm:$0xff]  }
 0x17d   :  { %v991_v19 = vadd.f32 %v2594_v37, %v722_v18  ;;  %v1022_v22 = vmax.f32 %v990_v15, 0.0  ;;  %v2045_v15 = vld [vmem:[%s2741_s5 + $0x64] ss:$8 sps:$4 sm:$0xff]   ;;  %v2050_v18 = vld [vmem:[%s2741_s5 + $0x70] ss:$8 sps:$4 sm:$0xff]  }
 0x17e   :  { %v1025_v21 = vmax.f32 %v993_v17, 0.0  ;;  %v2048_v17 = vld [vmem:[%s2741_s5 + $0x74] ss:$8 sps:$4 sm:$0xff]  }
 0x17f   :  { %v1023_v23 = vmax.f32 %v991_v19, 0.0  ;;  %v2051_v19 = vld [vmem:[%s2743_s7] sm:$0xff]  }
 0x180   :  { %v1063_v24 = vpack.c.bf16 %v1025_v21, %v1024_v20 }
 0x181   :  { %v1909_v25 = vpop.f32.mrb[20].mxu0  ;;  %v1062_v28 = vpack.c.bf16 %v1023_v23, %v1022_v22 }
 0x182   :  { %v996_v29 = vadd.f32 %v1909_v25, %v2607_v48  ;;  %v735_v30 = vpop.f32.mrb[21].mxu0 }
 0x183   :  { %v994_v40 = vadd.f32 %v2603_v44, %v735_v30  ;;  %v1910_v32 = vpop.f32.mrb[22].mxu0  ;;  %1747 = vmatprep.subr.bf16.mxu1 %v1062_v28  ;;  %v1094_v30 = vpop.permute.xlu1 %1093 }
 0x184   :  { %v997_v35 = vadd.f32 %v1910_v32, %v2609_v49  ;;  %v738_v41 = vpop.f32.mrb[23].mxu0  ;;  %1748 = vmatpush3.bf16.msra.mxu1 %v2625_v12  ;;  %v1028_v33 = vmax.f32 %v996_v29, 0.0 }
 0x185   :  { %v995_v37 = vadd.f32 %v2605_v45, %v738_v41  ;;  %1749 = vmatprep.subr.bf16.mxu1 %v1063_v24  ;;  %v1026_v36 = vmax.f32 %v994_v40, 0.0  ;;  %v1089_v24 = vpop.permute.xlu0 %1088 }
 0x186   :  { %v1029_v34 = vmax.f32 %v997_v35, 0.0 }
 0x187   :  { %v1027_v39 = vmax.f32 %v995_v37, 0.0 }
 0x188   :  { %v1065_v42 = vpack.c.bf16 %v1029_v34, %v1028_v33  ;;  %1750 = vmatpush3.bf16.msra.mxu1 %v2621_v9 }
 0x189   :  { %v1064_v48 = vpack.c.bf16 %v1027_v39, %v1026_v36  ;;  %v1913_v43 = vpop.f32.mrb[24].mxu0  ;;  %v1099_v39 = vpop.permute.xlu0 %1098 }
 0x18a   :  { %v1000_v44 = vadd.f32 %v1913_v43, %v2615_v56  ;;  %v751_v46 = vpop.f32.mrb[25].mxu0 }
 0x18b   :  { %v998_v49 = vadd.f32 %v2611_v52, %v751_v46  ;;  %v1914_v47 = vpop.f32.mrb[26].mxu0  ;;  %1751 = vmatprep.subr.bf16.mxu1 %v1064_v48 }
 0x18c   :  { %v1001_v12 = vadd.f32 %v1914_v47, %v2617_v57  ;;  %v754_v45 = vpop.f32.mrb[27].mxu0  ;;  %1752 = vmatpush3.bf16.msra.mxu1 %v2629_v27  ;;  %v1032_v58 = vmax.f32 %v1000_v44, 0.0  ;;  %v1104_v44 = vpop.permute.xlu1 %1103 }
 0x18d   :  { %v999_v51 = vadd.f32 %v2613_v53, %v754_v45  ;;  %1753 = vmatprep.subr.bf16.mxu1 %v1065_v42  ;;  %v1030_v9 = vmax.f32 %v998_v49, 0.0 }
 0x18e   :  { %v1033_v60 = vmax.f32 %v1001_v12, 0.0 }
 0x18f   :  { %v1031_v61 = vmax.f32 %v999_v51, 0.0 }
 0x190   :  { %v1067_v63 = vpack.c.bf16 %v1033_v60, %v1032_v58  ;;  %1754 = vmatpush3.bf16.msra.mxu1 %v2627_v26 }
 0x191   :  { %v1066_v56 = vpack.c.bf16 %v1031_v61, %v1030_v9  ;;  %v1917_v54 = vpop.f32.mrb[28].mxu0  ;;  %v1109_v9 = vpop.permute.xlu0 %1108 }
 0x192   :  { %v1004_v52 = vadd.f32 %v1917_v54, %v2631_v31  ;;  %v767_v0 = vpop.f32.mrb[29].mxu0  ;;  %v1114_v54 = vpop.permute.xlu1 %1113 }
 0x193   :  { %v1002_v57 = vadd.f32 %v2619_v6, %v767_v0  ;;  %v1918_v62 = vpop.f32.mrb[30].mxu0  ;;  %1755 = vmatprep.subr.bf16.mxu1 %v1066_v56  ;;  %v2027_v6 = vld [vmem:[%s2741_s5] ss:$8 sps:$4 sm:$0xff]  }
 0x194   :  { %v1005_v27 = vadd.f32 %v1918_v62, %v2633_v38  ;;  %v770_v53 = vpop.f32.mrb[31].mxu0  ;;  %1756 = vmatpush3.bf16.msra.mxu1 %v2637_v59  ;;  %v1036_v2 = vmax.f32 %v1004_v52, 0.0  ;;  %v2032_v38 = vld [vmem:[%s2741_s5 + $0x10] ss:$8 sps:$4 sm:$0xff]   ;;  %v2035_v59 = vld [vmem:[%s2741_s5 + $0x20] ss:$8 sps:$4 sm:$0xff]  }
 0x195   :  { %v1003_v1 = vadd.f32 %v2623_v10, %v770_v53  ;;  %1757 = vmatprep.subr.bf16.mxu1 %v1067_v63  ;;  %v1034_v26 = vmax.f32 %v1002_v57, 0.0  ;;  %v2030_v10 = vld [vmem:[%s2741_s5 + $0x14] ss:$8 sps:$4 sm:$0xff]  }
 0x196   :  { %v1037_v3 = vmax.f32 %v1005_v27, 0.0 }
 0x197   :  { %v1035_v55 = vmax.f32 %v1003_v1, 0.0 }
 0x198   :  { %v1069_v4 = vpack.c.bf16 %v1037_v3, %v1036_v2  ;;  %1758 = vmatpush3.bf16.msra.mxu1 %v2635_v50  ;;  %v2033_v50 = vld [vmem:[%s2741_s5 + $0x24] ss:$8 sps:$4 sm:$0xff]   ;;  %v1119_v3 = vpop.permute.xlu0 %1118 }
 0x199   :  { %v1068_v31 = vpack.c.bf16 %v1035_v55, %v1034_v26 }
 0x19b   :  { %1759 = vmatprep.subr.bf16.mxu1 %v1068_v31  ;;  %v1124_v31 = vpop.permute.xlu1 %1123 }
 0x19c   :  { %1760 = vmatpush3.bf16.msra.mxu1 %v2641_v8  ;;  %v2039_v8 = vld [vmem:[%s2741_s5 + $0x44] ss:$8 sps:$4 sm:$0xff]  }
 0x19d   :  { %1761 = vmatprep.subr.bf16.mxu1 %v1069_v4 }
 0x1a0   :  { %1762 = vmatpush3.bf16.msra.mxu1 %v2639_v7  ;;  %v2038_v7 = vld [vmem:[%s2741_s5 + $0x30] ss:$8 sps:$4 sm:$0xff]  }
 0x1a3   :  { %1279 = vmatmul.mubr.bf16.vlgmr.msra.gmra.mrb[0].mxu1 %v2027_v6 }
 0x1a4   :  { %1286 = vmatprep.mubr.bf16.mxu1 %v2030_v10 }
 0x1ab   :  { %1287 = vmatmul.mubr.bf16.gmra.mrb[4].mxu1 %v2032_v38 }
 0x1ac   :  { %1294 = vmatprep.mubr.bf16.mxu1 %v2033_v50 }
 0x1b3   :  { %1295 = vmatmul.mubr.bf16.gmra.mrb[8].mxu1 %v2035_v59 }
 0x1b4   :  { %1302 = vmatprep.mubr.bf16.mxu1 %v2036_v5 }
 0x1bb   :  { %1303 = vmatmul.mubr.bf16.gmra.mrb[12].mxu1 %v2038_v7 }
 0x1bc   :  { %1310 = vmatprep.mubr.bf16.mxu1 %v2039_v8 }
 0x1c3   :  { %1311 = vmatmul.mubr.bf16.gmra.mrb[16].mxu1 %v2041_v11  ;;  %v1129_v11 = vpop.permute.xlu0 %1128 }
 0x1c4   :  { %1318 = vmatprep.mubr.bf16.mxu1 %v2042_v13 }
 0x1cb   :  { %1319 = vmatmul.mubr.bf16.gmra.mrb[20].mxu1 %v2044_v14 }
 0x1cc   :  { %1326 = vmatprep.mubr.bf16.mxu1 %v2045_v15 }
 0x1d3   :  { %1327 = vmatmul.mubr.bf16.gmra.mrb[24].mxu1 %v2047_v16  ;;  %v1134_v16 = vpop.permute.xlu1 %1133 }
 0x1d4   :  { %1334 = vmatprep.mubr.bf16.mxu1 %v2048_v17 }
 0x1db   :  { %1335 = vmatmul.mubr.bf16.gmra.mrb[28].mxu1 %v2050_v18 }
 0x1dc   :  { %1935 = vmatprep.mubr.bf16.mxu1 %v2051_v19 }
 0x276   :  { %v1763_v20 = vpop.f32.mrb[0].mxu1 }
 0x277   :  { %v1764_v21 = vpop.f32.mrb[1].mxu1 }
 0x278   :  { %v1765_v22 = vadd.f32 %v1764_v21, %v1763_v20  ;;  %v1766_v23 = vpop.f32.mrb[2].mxu1 }
 0x279   :  { %v1767_v25 = vpop.f32.mrb[3].mxu1 }
 0x27a   :  { %v1281_v28 = vadd.f32 %v1765_v22, %v1089_v24  ;;  %v1768_v29 = vadd.f32 %v1767_v25, %v1766_v23  ;;  %v1139_v25 = vpop.permute.xlu0 %1138 }
 0x27c   :  { %v1284_v40 = vadd.f32 %v1768_v29, %v1094_v30  ;;  %v1343_v32 = vmax.f32 %v1281_v28, 0.0 }
 0x27e   :  { %v1344_v35 = vmax.f32 %v1284_v40, 0.0  ;;  %v1769_v41 = vpop.f32.mrb[4].mxu1  ;;  %v1144_v40 = vpop.permute.xlu1 %1143 }
 0x27f   :  { %v1770_v37 = vpop.f32.mrb[5].mxu1 }
 0x280   :  { %v1771_v33 = vadd.f32 %v1770_v37, %v1769_v41  ;;  %v1772_v34 = vpop.f32.mrb[6].mxu1  ;;  %v1367_v36 = vpack.c.bf16 %v1344_v35, %v1343_v32 }
 0x281   :  { %v1773_v42 = vpop.f32.mrb[7].mxu1 }
 0x282   :  { %v1289_v48 = vadd.f32 %v1771_v33, %v1099_v39  ;;  %v1774_v43 = vadd.f32 %v1773_v42, %v1772_v34  ;;  %1919 = vmatprep.subr.bf16.mxu1 %v1367_v36  ;;  %v1149_v42 = vpop.permute.xlu0 %1148 }
 0x283   :  { %1920 = vmatpush3.bf16.msra.mxu1 %v1367_v36 }
 0x284   :  { %v1292_v46 = vadd.f32 %v1774_v43, %v1104_v44  ;;  %v1345_v49 = vmax.f32 %v1289_v48, 0.0 }
 0x286   :  { %v1346_v47 = vmax.f32 %v1292_v46, 0.0  ;;  %v1775_v12 = vpop.f32.mrb[8].mxu1  ;;  %v1154_v46 = vpop.permute.xlu1 %1153 }
 0x287   :  { %v1776_v45 = vpop.f32.mrb[9].mxu1 }
 0x288   :  { %v1777_v51 = vadd.f32 %v1776_v45, %v1775_v12  ;;  %v1778_v58 = vpop.f32.mrb[10].mxu1  ;;  %v1368_v60 = vpack.c.bf16 %v1346_v47, %v1345_v49 }
 0x289   :  { %v1779_v61 = vpop.f32.mrb[11].mxu1 }
 0x28a   :  { %v1297_v63 = vadd.f32 %v1777_v51, %v1109_v9  ;;  %v1780_v56 = vadd.f32 %v1779_v61, %v1778_v58  ;;  %1921 = vmatprep.subr.bf16.mxu1 %v1368_v60  ;;  %v1159_v61 = vpop.permute.xlu0 %1158 }
 0x28b   :  { %1922 = vmatpush3.bf16.msra.mxu1 %v1368_v60 }
 0x28c   :  { %v1300_v52 = vadd.f32 %v1780_v56, %v1114_v54  ;;  %v1347_v0 = vmax.f32 %v1297_v63, 0.0 }
 0x28e   :  { %v1348_v57 = vmax.f32 %v1300_v52, 0.0  ;;  %v1781_v62 = vpop.f32.mrb[12].mxu1  ;;  %v1164_v52 = vpop.permute.xlu1 %1163 }
 0x28f   :  { %v1782_v27 = vpop.f32.mrb[13].mxu1 }
 0x290   :  { %v1783_v53 = vadd.f32 %v1782_v27, %v1781_v62  ;;  %v1784_v1 = vpop.f32.mrb[14].mxu1  ;;  %v1369_v2 = vpack.c.bf16 %v1348_v57, %v1347_v0 }
 0x291   :  { %v1785_v26 = vpop.f32.mrb[15].mxu1 }
 0x292   :  { %v1305_v55 = vadd.f32 %v1783_v53, %v1119_v3  ;;  %v1786_v4 = vadd.f32 %v1785_v26, %v1784_v1  ;;  %1923 = vmatprep.subr.bf16.mxu1 %v1369_v2  ;;  %v2052_v53 = vld [vmem:[%s2743_s7 + $0x8] sm:$0xff]   ;;  %v2053_v1 = vld [vmem:[%s2743_s7 + $0x10] sm:$0xff]   ;;  %v1386_v3 = vpop.permute.xlu0 %1385  ;;  %v1391_v26 = vpop.permute.xlu1 %1390 }
 0x293   :  { %1924 = vmatpush3.bf16.msra.mxu1 %v1369_v2  ;;  %v2054_v2 = vld [vmem:[%s2743_s7 + $0x18] sm:$0xff]   ;;  %s2080_s7 = smov [#allocation3]  }
 0x294   :  { %v1308_v6 = vadd.f32 %v1786_v4, %v1124_v31  ;;  %v1349_v10 = vmax.f32 %v1305_v55, 0.0  ;;  %s1607_s17 = sshll.u32 %s2080_s7, 4  ;;  %s1608_s17 = int_to_ptr.vmem [resolvable:$true] %s1607_s17 }
 0x295   :  { %s2055_s6 = scalar_lea.vmem %s1608_s17, 16  ;;  %s2059_s18 = scalar_lea.vmem %s1608_s17, 32 }
 0x296   :  { %v1350_v38 = vmax.f32 %v1308_v6, 0.0  ;;  %v1787_v50 = vpop.f32.mrb[16].mxu1  ;;  %v1396_v55 = vpop.permute.xlu0 %1395  ;;  %p2056_p0 = scmp.ne.s32.totalorder %s1608_s17, %s2055_s6  ;;  %p2060_p1 = scmp.lt.s32.totalorder %s1608_s17, %s1608_s17 }
 0x297   :  { %v1788_v59 = vpop.f32.mrb[17].mxu1  ;;  %v1401_v4 = vpop.permute.xlu1 %1400  ;;  %p2061_p2 = scmp.lt.s32.totalorder %s2059_s18, %s2055_s6 }
 0x298   :  { %v1789_v5 = vadd.f32 %v1788_v59, %v1787_v50  ;;  %v1790_v7 = vpop.f32.mrb[18].mxu1  ;;  %v1370_v8 = vpack.c.bf16 %v1350_v38, %v1349_v10 }
 0x299   :  { %v1791_v13 = vpop.f32.mrb[19].mxu1  ;;  %p2062_p3 = por %p2061_p2, %p2060_p1 }
 0x29a   :  { %v1313_v14 = vadd.f32 %v1789_v5, %v1129_v11  ;;  %v1792_v15 = vadd.f32 %v1791_v13, %v1790_v7  ;;  %1925 = vmatprep.subr.bf16.mxu1 %v1370_v8  ;;  %v1531_v31 = vpop.permute.xlu0 %1530 }
 0x29b   :  { %1926 = vmatpush3.bf16.msra.mxu1 %v1370_v8  ;;  %v1536_v6 = vpop.permute.xlu1 %1535  ;;  %p2063_p4 = pnand %p2062_p3, %p2056_p0 }
 0x29c   :  { %v1316_v17 = vadd.f32 %v1792_v15, %v1134_v16  ;;  %v1351_v18 = vmax.f32 %v1313_v14, 0.0 }
 0x29e   :  { %v1352_v19 = vmax.f32 %v1316_v17, 0.0  ;;  %v1793_v20 = vpop.f32.mrb[20].mxu1  ;;  %v1406_v10 = vpop.permute.xlu0 %1405 }
 0x29f   :  { %v1794_v21 = vpop.f32.mrb[21].mxu1  ;;  %v1541_v38 = vpop.permute.xlu1 %1540 }
 0x2a0   :  { %v1795_v22 = vadd.f32 %v1794_v21, %v1793_v20  ;;  %v1796_v23 = vpop.f32.mrb[22].mxu1  ;;  %v1371_v24 = vpack.c.bf16 %v1352_v19, %v1351_v18 }
 0x2a1   :  { %v1797_v28 = vpop.f32.mrb[23].mxu1 }
 0x2a2   :  { %v1321_v29 = vadd.f32 %v1795_v22, %v1139_v25  ;;  %v1798_v30 = vadd.f32 %v1797_v28, %v1796_v23  ;;  %1927 = vmatprep.subr.bf16.mxu1 %v1371_v24  ;;  %v1411_v50 = vpop.permute.xlu0 %1410 }
 0x2a3   :  { %1928 = vmatpush3.bf16.msra.mxu1 %v1371_v24  ;;  %v1546_v5 = vpop.permute.xlu1 %1545 }
 0x2a4   :  { %v1324_v32 = vadd.f32 %v1798_v30, %v1144_v40  ;;  %v1353_v35 = vmax.f32 %v1321_v29, 0.0 }
 0x2a6   :  { %v1354_v41 = vmax.f32 %v1324_v32, 0.0  ;;  %v1799_v37 = vpop.f32.mrb[24].mxu1  ;;  %v1416_v18 = vpop.permute.xlu0 %1415 }
 0x2a7   :  { %v1800_v33 = vpop.f32.mrb[25].mxu1  ;;  %v1551_v21 = vpop.permute.xlu1 %1550 }
 0x2a8   :  { %v1801_v34 = vadd.f32 %v1800_v33, %v1799_v37  ;;  %v1802_v36 = vpop.f32.mrb[26].mxu1  ;;  %v1372_v39 = vpack.c.bf16 %v1354_v41, %v1353_v35 }
 0x2a9   :  { %v1803_v48 = vpop.f32.mrb[27].mxu1 }
 0x2aa   :  { %v1329_v43 = vadd.f32 %v1801_v34, %v1149_v42  ;;  %v1804_v44 = vadd.f32 %v1803_v48, %v1802_v36  ;;  %1929 = vmatprep.subr.bf16.mxu1 %v1372_v39  ;;  %v1421_v41 = vpop.permute.xlu0 %1420 }
 0x2ab   :  { %1930 = vmatpush3.bf16.msra.mxu1 %v1372_v39  ;;  %v1556_v48 = vpop.permute.xlu1 %1555 }
 0x2ac   :  { %v1332_v49 = vadd.f32 %v1804_v44, %v1154_v46  ;;  %v1355_v47 = vmax.f32 %v1329_v43, 0.0 }
 0x2ae   :  { %v1356_v12 = vmax.f32 %v1332_v49, 0.0  ;;  %v1805_v45 = vpop.f32.mrb[28].mxu1 }
 0x2af   :  { %v1806_v51 = vpop.f32.mrb[29].mxu1 }
 0x2b0   :  { %v1807_v58 = vadd.f32 %v1806_v51, %v1805_v45  ;;  %v1808_v60 = vpop.f32.mrb[30].mxu1  ;;  %v1373_v9 = vpack.c.bf16 %v1356_v12, %v1355_v47  ;;  %v1561_v51 = vpop.permute.xlu0 %1560 }
 0x2b1   :  { %v1809_v63 = vpop.f32.mrb[31].mxu1 }
 0x2b2   :  { %v1337_v56 = vadd.f32 %v1807_v58, %v1159_v61  ;;  %v1810_v54 = vadd.f32 %v1809_v63, %v1808_v60  ;;  %1931 = vmatprep.subr.bf16.mxu1 %v1373_v9 }
 0x2b3   :  { %1932 = vmatpush3.bf16.msra.mxu1 %v1373_v9  ;;  %v1566_v9 = vpop.permute.xlu1 %1565 }
 0x2b4   :  { %v1340_v0 = vadd.f32 %v1810_v54, %v1164_v52  ;;  %v1357_v57 = vmax.f32 %v1337_v56, 0.0  ;;  %v1595_v56 = vlaneseq }
 0x2b6   :  { %v1358_v62 = vmax.f32 %v1340_v0, 0.0  ;;  %v1596_v0 = vshrl.u32 %v1595_v56, 7 }
 0x2b8   :  { %v1374_v27 = vpack.c.bf16 %v1358_v62, %v1357_v57 }
 0x2ba   :  { %1933 = vmatprep.subr.bf16.mxu1 %v1374_v27 }
 0x2bb   :  { %1934 = vmatpush3.bf16.msra.mxu1 %v1374_v27  ;;  %v1597_v27 = vsub.s32 0, %v1596_v0 }
 0x2be   :  { %1936 = vmatmul.mubr.bf16.vlgmr.msra.gmra.mrb[32].mxu1 %v2052_v53 }
 0x2bf   :  { %1939 = vmatprep.mubr.bf16.mxu1 %v2053_v1  ;;  %v1593_v1 = vpop.permute.xlu0 %1592 }
 0x2c6   :  { %1940 = vmatmul.mubr.bf16.gmra.mrb[36].mxu1 %v2054_v2 }
 0x391   :  { %v1937_v59 = vpop.f32.mrb[32].mxu1 }
 0x392   :  { %v1481_v7 = vpop.f32.mrb[33].mxu1  ;;  %v1490_v8 = vadd.f32 %v1937_v59, %v1396_v55 }
 0x393   :  { %v1482_v11 = vadd.f32 %v1481_v7, %v1386_v3  ;;  %v1938_v13 = vpop.f32.mrb[34].mxu1  ;;  %v1598_v3 = vrot.slane %v1593_v1, %v1597_v27 }
 0x394   :  { %v1493_v14 = vadd.f32 %v1938_v13, %v1401_v4  ;;  %v1484_v15 = vpop.f32.mrb[35].mxu1  ;;  %v1514_v19 = vmax.f32 %v1490_v8, 0.0 }
 0x395   :  { %v1512_v16 = vmax.f32 %v1482_v11, 0.0  ;;  %v1485_v17 = vadd.f32 %v1484_v15, %v1391_v26 }
 0x396   :  { %v1515_v22 = vmax.f32 %v1493_v14, 0.0  ;;  %v1570_v29 = vmul.f32 %v1541_v38, %v1514_v19 }
 0x397   :  { %v1513_v20 = vmax.f32 %v1485_v17, 0.0  ;;  %v1568_v23 = vmul.f32 %v1531_v31, %v1512_v16 }
 0x398   :  { %v1571_v37 = vmul.f32 %v1546_v5, %v1515_v22 }
 0x399   :  { %v1569_v24 = vmul.f32 %v1536_v6, %v1513_v20  ;;  %v1941_v25 = vpop.f32.mrb[36].mxu1 }
 0x39a   :  { %v1497_v28 = vpop.f32.mrb[37].mxu1  ;;  %v1506_v40 = vadd.f32 %v1941_v25, %v1416_v18 }
 0x39b   :  { %v1576_v30 = vadd.f32 %v1569_v24, %v1568_v23  ;;  %v1498_v32 = vadd.f32 %v1497_v28, %v1406_v10  ;;  %v1942_v35 = vpop.f32.mrb[38].mxu1 }
 0x39c   :  { %v1500_v33 = vpop.f32.mrb[39].mxu1  ;;  %v1509_v39 = vadd.f32 %v1942_v35, %v1421_v41  ;;  %v1518_v43 = vmax.f32 %v1506_v40, 0.0 }
 0x39d   :  { %v1577_v34 = vadd.f32 %v1576_v30, %v1570_v29  ;;  %v1516_v36 = vmax.f32 %v1498_v32, 0.0  ;;  %v1501_v42 = vadd.f32 %v1500_v33, %v1411_v50 }
 0x39e   :  { %v1519_v12 = vmax.f32 %v1509_v39, 0.0  ;;  %v1574_v58 = vmul.f32 %v1561_v51, %v1518_v43 }
 0x39f   :  { %v1572_v44 = vmul.f32 %v1551_v21, %v1516_v36  ;;  %v1578_v46 = vadd.f32 %v1577_v34, %v1571_v37  ;;  %v1517_v49 = vmax.f32 %v1501_v42, 0.0 }
 0x3a0   :  { %v1575_v61 = vmul.f32 %v1566_v9, %v1519_v12 }
 0x3a1   :  { %v1579_v47 = vadd.f32 %v1578_v46, %v1572_v44  ;;  %v1573_v45 = vmul.f32 %v1556_v48, %v1517_v49 }
 0x3a3   :  { %v1580_v60 = vadd.f32 %v1579_v47, %v1573_v45 }
 0x3a5   :  { %v1581_v63 = vadd.f32 %v1580_v60, %v1574_v58 }
 0x3a7   :  { %v1582_v54 = vadd.f32 %v1581_v63, %v1575_v61 }
 0x3a9   :  { %v1583_v52 = vrot.slane %v1582_v54, 4 }
 0x3ab   :  { %v1584_v57 = vadd.f32 %v1583_v52, %v1582_v54 }
 0x3ad   :  { %v1585_v62 = vrot.slane %v1584_v57, 2 }
 0x3af   :  { %v1586_v53 = vadd.f32 %v1585_v62, %v1584_v57 }
 0x3b1   :  { %v1587_v2 = vrot.slane %v1586_v53, 1 }
 0x3b3   :  { %v1588_v26 = vadd.f32 %v1587_v2, %v1586_v53 }
 0x3b5   :  { %v1599_v55 = vadd.f32 %v1598_v3, %v1588_v26 }
 0x3b7   :  { %1600 = vst [vmem:[#allocation3] sm:$0x1] %v1599_v55 }
 0x3b8   :  { %2066 = shalt.err (!%p2063_p4)
}
 0x3b9   :  { %s2067_s20 = scalar_lea.hbm %s2747_s11, 16 }
 0x3ba   :  { %p2068_p5 = scmp.ne.s32.totalorder %s2747_s11, %s2067_s20  ;;  %p2071_p6 = scmp.lt.u32.totalorder %s2067_s20, %s2747_s11 }
 0x3bc   :  { %p2073_p7 = pnand %p2071_p6, %p2068_p5 }
 0x3be   :  { %2076 = shalt.err (!%p2073_p7)
}
 0x3bf   :  { %1610 = dma.vmem_to_hbm [thread:$0]  %s1608_s17, 16, %s2747_s11, [#allocation4]  }
 0x3c0   :  { %2077 = dma.done.wait [#allocation4], 16  }
 0x3c1   :  { %2078 = vsyncadd [#allocation4], 4294967280 }
 0x3c2   :  { %1614 = vsyncpa [#allocation4], 1 }

</bundles_post_ra>
